<compile_context>
chip_gen: v7x
topology: tpu7x:2x2x1
jax: 0.10.0
libtpu: 0.0.40
codegen_flags: <defaults>
</compile_context>

<pallas_src>
import jax
import jax.numpy as jnp
from jax.experimental import pallas as pl
from jax.experimental.pallas import tpu as pltpu


NEG_SLOPE = 0.01  # torch.nn.functional.leaky_relu default


def _leaky_relu(x):
    # equivalent to where(x > 0, x, slope*x) for 0 < slope < 1; single vmax+vmul
    return jnp.maximum(x, NEG_SLOPE * x)


def _round_up(n, m):
    return ((n + m - 1) // m) * m


def critic_kernel(
    state_ref, action_ref,
    w0_ref, b0_ref,
    w1s_ref, w1a_ref, b1_ref,
    w2_ref, b2_ref,
    w3_ref, b3_ref,
    out_ref,
):
    """One batch tile of the fused Critic MLP (weights resident in VMEM)."""
    state = state_ref[...]        # (TB, state_n)  bf16
    action = action_ref[...]      # (TB, action_n) bf16

    # layer 0: state -> h0
    h0 = jnp.dot(state, w0_ref[...], preferred_element_type=jnp.float32)
    h0 = _leaky_relu(h0 + b0_ref[...])

    # layer 1: cat([h0, action]) @ W1 == h0 @ W1[:h0,:] + action @ W1[h0:,:]
    x = (
        jnp.dot(h0.astype(jnp.bfloat16), w1s_ref[...],
                preferred_element_type=jnp.float32)
        + jnp.dot(action, w1a_ref[...], preferred_element_type=jnp.float32)
        + b1_ref[...]
    )
    x = _leaky_relu(x)

    # layer 2 (extra hidden layer)
    x = jnp.dot(x.astype(jnp.bfloat16), w2_ref[...],
                preferred_element_type=jnp.float32)
    x = _leaky_relu(x + b2_ref[...])

    # final layer: scalar Q per row, no activation
    q = jnp.dot(x.astype(jnp.bfloat16), w3_ref[...],
                preferred_element_type=jnp.float32) + b3_ref[...]   # (TB, 1) f32

    # lane-dense store: (TB, 1) column -> (1, 1, TB) row (rides the XLU slot).
    tb = q.shape[0]
    out_ref[...] = jnp.transpose(q).reshape(1, 1, tb).astype(out_ref.dtype)


def critic_forward(state, action, params, *, block_batch=None):
    """params: dict with w0,b0,w1s,w1a,b1,w2,b2,w3,b3 (weights stored [in,out])."""
    batch, state_n = state.shape
    action_n = action.shape[1]
    h0 = params["w0"].shape[1]
    h1 = params["w1s"].shape[1]
    h2 = params["w2"].shape[1]

    # Batch tile: multiple of 8 sublanes, large enough to amortise the
    # ~0.35us/grid-step overhead; the per-tile VMEM footprint is tiny even at
    # TB=512, so it also fits v7x's smaller (64 MiB) VMEM trivially.
    if block_batch is None:
        block_batch = min(512, _round_up(batch, 8))
    tb = _round_up(block_batch, 8)
    padded = _round_up(batch, tb)
    grid = padded // tb

    if padded != batch:
        pad = padded - batch
        state = jnp.pad(state, ((0, pad), (0, 0)))
        action = jnp.pad(action, ((0, pad), (0, 0)))

    # bf16 streaming operands and weights; biases + epilogue stay f32.
    state_bf = state.astype(jnp.bfloat16)
    action_bf = action.astype(jnp.bfloat16)
    w0 = params["w0"].astype(jnp.bfloat16)
    w1s = params["w1s"].astype(jnp.bfloat16)
    w1a = params["w1a"].astype(jnp.bfloat16)
    w2 = params["w2"].astype(jnp.bfloat16)
    w3 = params["w3"].astype(jnp.bfloat16)
    b0 = params["b0"].astype(jnp.float32)
    b1 = params["b1"].astype(jnp.float32)
    b2 = params["b2"].astype(jnp.float32)
    b3 = params["b3"].astype(jnp.float32)

    def batch_spec(feat):
        # NOTE: if the state DMA is ever exposed, add pipeline_mode=pl.Buffered(3).
        return pl.BlockSpec((tb, feat), lambda i: (i, 0))

    def const_spec(arr):
        # Same block every grid step -> fetched once, resident in VMEM.
        return pl.BlockSpec(arr.shape, lambda i: (0, 0))

    operands = (state_bf, action_bf, w0, b0, w1s, w1a, b1, w2, b2, w3, b3)
    in_specs = [
        batch_spec(state_n), batch_spec(action_n),
        const_spec(w0), const_spec(b0),
        const_spec(w1s), const_spec(w1a), const_spec(b1),
        const_spec(w2), const_spec(b2),
        const_spec(w3), const_spec(b3),
    ]
    out_spec = pl.BlockSpec((1, 1, tb), lambda i: (i, 0, 0))

    flops = 2 * padded * (state_n * h0 + h0 * h1 + action_n * h1 + h1 * h2 + h2)
    bytes_accessed = (
        padded * (state_n + action_n) * 2                 # bf16 inputs streamed
        + padded * 4                                      # f32 output
        + sum(int(o.size) * o.dtype.itemsize for o in operands[2:])  # params
    )

    q_rows = pl.pallas_call(
        critic_kernel,
        grid=(grid,),
        in_specs=in_specs,
        out_specs=out_spec,
        out_shape=jax.ShapeDtypeStruct((grid, 1, tb), jnp.float32),
        compiler_params=pltpu.CompilerParams(
            dimension_semantics=("parallel",),
        ),
        cost_estimate=pl.CostEstimate(
            flops=flops, transcendentals=0, bytes_accessed=bytes_accessed),
    )(*operands)

    # (grid, 1, TB) lane-dense rows -> (batch, 1) column.
    return q_rows.reshape(padded, 1)[:batch]


def init_critic_params(key, state_n, action_n, layer_nodes):
    """Deterministic init mirroring the PyTorch module's layer shapes.

    PyTorch stores Linear weight as [out, in]; we keep [in, out] for the kernel.
    Layer 1's weight (in = layer_nodes[0] + action_n) is split into the
    state-hidden part (w1s) and the action part (w1a) so the kernel avoids an
    explicit concatenate.  (Bounds follow the module's reset_params, which uses
    1/sqrt(weight.size()[0]) == 1/sqrt(out_features); irrelevant to forward
    correctness for given weights.)
    """
    assert len(layer_nodes) >= 3, "Critic NN must have at least 3 layers"
    keys = jax.random.split(key, 9)

    def uni(k, shape, lim):
        return jax.random.uniform(k, shape, jnp.float32, -lim, lim)

    h0, h1, h2 = layer_nodes[0], layer_nodes[1], layer_nodes[2]

    w0 = uni(keys[0], (state_n, h0), 1.0 / jnp.sqrt(h0))
    b0 = uni(keys[1], (1, h0), 1.0 / jnp.sqrt(h0))

    lim1 = 1.0 / jnp.sqrt(h1)
    w1s = uni(keys[2], (h0, h1), lim1)
    w1a = uni(keys[3], (action_n, h1), lim1)
    b1 = uni(keys[4], (1, h1), lim1)

    lim2 = 1.0 / jnp.sqrt(h2)
    w2 = uni(keys[5], (h1, h2), lim2)
    b2 = uni(keys[6], (1, h2), lim2)

    w3 = uni(keys[7], (h2, 1), 0.003)
    b3 = uni(keys[8], (1, 1), 0.003)

    return dict(w0=w0, b0=b0, w1s=w1s, w1a=w1a, b1=b1, w2=w2, b2=b2, w3=w3, b3=b3)


def critic_reference(state, action, params):
    """Pure-JAX f32 reference of the PyTorch forward (for correctness check)."""
    def lrelu(x):
        return jnp.where(x > 0, x, NEG_SLOPE * x)

    h0 = lrelu(state @ params["w0"] + params["b0"])
    w1 = jnp.concatenate([params["w1s"], params["w1a"]], axis=0)
    x = jnp.concatenate([h0, action], axis=1)
    x = lrelu(x @ w1 + params["b1"])
    x = lrelu(x @ params["w2"] + params["b2"])
    return x @ params["w3"] + params["b3"]


def _check(out, ref):
    assert out.shape == ref.shape
    # bf16 matmul operands + f32 accumulation -> loosened tolerance.
    assert jnp.allclose(out, ref, atol=2e-3, rtol=2e-2), (
        f"max abs err = {float(jnp.max(jnp.abs(out - ref)))}"
    )


if __name__ == "__main__":
    key = jax.random.PRNGKey(0)
    k_params, k_state, k_action = jax.random.split(key, 3)

    state_n, action_n = 16, 4
    layer_nodes = [32, 32, 32]          # Critic requires >= 3 hidden layers
    params = init_critic_params(k_params, state_n, action_n, layer_nodes)

    # Case 1: small batch, single grid step.
    batch = 8
    state = jax.random.normal(k_state, (batch, state_n), jnp.float32)
    action = jax.random.normal(k_action, (batch, action_n), jnp.float32)
    out = jax.block_until_ready(critic_forward(state, action, params))
    _check(out, critic_reference(state, action, params))

    # Case 2: multi-tile batch grid (exercises streaming + parallel axis).
    batch = 64
    state = jax.random.normal(jax.random.PRNGKey(1), (batch, state_n), jnp.float32)
    action = jax.random.normal(jax.random.PRNGKey(2), (batch, action_n), jnp.float32)
    out = jax.block_until_ready(
        critic_forward(state, action, params, block_batch=16))
    _check(out, critic_reference(state, action, params))

    print("KERNEL_OK")
</pallas_src>

<mosaic_0001>
module attributes {stable_mosaic.version = 11 : i64} {
  func.func @critic_kernel(%arg0: i32, %arg1: memref<8x16xbf16, #tpu.memory_space<vmem>>, %arg2: memref<8x4xbf16, #tpu.memory_space<vmem>>, %arg3: memref<16x32xbf16, #tpu.memory_space<vmem>>, %arg4: memref<1x32xf32, #tpu.memory_space<vmem>>, %arg5: memref<32x32xbf16, #tpu.memory_space<vmem>>, %arg6: memref<4x32xbf16, #tpu.memory_space<vmem>>, %arg7: memref<1x32xf32, #tpu.memory_space<vmem>>, %arg8: memref<32x32xbf16, #tpu.memory_space<vmem>>, %arg9: memref<1x32xf32, #tpu.memory_space<vmem>>, %arg10: memref<32x1xbf16, #tpu.memory_space<vmem>>, %arg11: memref<1x1xf32, #tpu.memory_space<vmem>>, %arg12: memref<1x1x8xf32, #tpu.memory_space<vmem>>) attributes {dimension_semantics = [#tpu.dimension_semantics<parallel>], iteration_bounds = array<i64: 1>, scalar_prefetch = 0 : i64, scratch_operands = 0 : i64, tpu.core_type = #tpu.core_type<tc>, window_params = [{transform_indices = @transform_0, window_bounds = array<i64: 8, 16>}, {transform_indices = @transform_1, window_bounds = array<i64: 8, 4>}, {pipeline_mode = #tpu.pipeline_mode<synchronous>, transform_indices = @transform_2, window_bounds = array<i64: 16, 32>}, {pipeline_mode = #tpu.pipeline_mode<synchronous>, transform_indices = @transform_3, window_bounds = array<i64: 1, 32>}, {pipeline_mode = #tpu.pipeline_mode<synchronous>, transform_indices = @transform_4, window_bounds = array<i64: 32, 32>}, {pipeline_mode = #tpu.pipeline_mode<synchronous>, transform_indices = @transform_5, window_bounds = array<i64: 4, 32>}, {pipeline_mode = #tpu.pipeline_mode<synchronous>, transform_indices = @transform_6, window_bounds = array<i64: 1, 32>}, {pipeline_mode = #tpu.pipeline_mode<synchronous>, transform_indices = @transform_7, window_bounds = array<i64: 32, 32>}, {pipeline_mode = #tpu.pipeline_mode<synchronous>, transform_indices = @transform_8, window_bounds = array<i64: 1, 32>}, {pipeline_mode = #tpu.pipeline_mode<synchronous>, transform_indices = @transform_9, window_bounds = array<i64: 32, 1>}, {pipeline_mode = #tpu.pipeline_mode<synchronous>, transform_indices = @transform_10, window_bounds = array<i64: 1, 1>}, {transform_indices = @transform_11, window_bounds = array<i64: 1, 1, 8>}]} {
    %c0 = arith.constant 0 : index
    %c0_0 = arith.constant 0 : index
    %0 = vector.load %arg1[%c0, %c0_0] : memref<8x16xbf16, #tpu.memory_space<vmem>>, vector<8x16xbf16>
    %c0_1 = arith.constant 0 : index
    %c0_2 = arith.constant 0 : index
    %1 = vector.load %arg2[%c0_1, %c0_2] : memref<8x4xbf16, #tpu.memory_space<vmem>>, vector<8x4xbf16>
    %c0_3 = arith.constant 0 : index
    %c0_4 = arith.constant 0 : index
    %2 = vector.load %arg3[%c0_3, %c0_4] : memref<16x32xbf16, #tpu.memory_space<vmem>>, vector<16x32xbf16>
    %cst = arith.constant dense<0.000000e+00> : vector<8x32xf32>
    %3 = tpu.matmul %0, %2, %cst {dimension_numbers = #tpu.dot_dimension_numbers<[1], [0], [0], [1], [0, 0, 1, 1], [], []>} : vector<8x16xbf16>, vector<16x32xbf16>, vector<8x32xf32> -> vector<8x32xf32>
    %c0_5 = arith.constant 0 : index
    %c0_6 = arith.constant 0 : index
    %4 = vector.load %arg4[%c0_5, %c0_6] : memref<1x32xf32, #tpu.memory_space<vmem>>, vector<1x32xf32>
    %5 = vector.broadcast %4 : vector<1x32xf32> to vector<8x32xf32>
    %6 = arith.addf %3, %5 : vector<8x32xf32>
    %cst_7 = arith.constant 0.00999999977 : f32
    %7 = vector.broadcast %cst_7 : f32 to vector<8x32xf32>
    %8 = arith.mulf %7, %6 : vector<8x32xf32>
    %9 = arith.maximumf %6, %8 : vector<8x32xf32>
    %10 = arith.truncf %9 : vector<8x32xf32> to vector<8x32xbf16>
    %c0_8 = arith.constant 0 : index
    %c0_9 = arith.constant 0 : index
    %11 = vector.load %arg5[%c0_8, %c0_9] : memref<32x32xbf16, #tpu.memory_space<vmem>>, vector<32x32xbf16>
    %cst_10 = arith.constant dense<0.000000e+00> : vector<8x32xf32>
    %12 = tpu.matmul %10, %11, %cst_10 {dimension_numbers = #tpu.dot_dimension_numbers<[1], [0], [0], [1], [0, 0, 1, 1], [], []>} : vector<8x32xbf16>, vector<32x32xbf16>, vector<8x32xf32> -> vector<8x32xf32>
    %c0_11 = arith.constant 0 : index
    %c0_12 = arith.constant 0 : index
    %13 = vector.load %arg6[%c0_11, %c0_12] : memref<4x32xbf16, #tpu.memory_space<vmem>>, vector<4x32xbf16>
    %cst_13 = arith.constant dense<0.000000e+00> : vector<8x32xf32>
    %14 = tpu.matmul %1, %13, %cst_13 {dimension_numbers = #tpu.dot_dimension_numbers<[1], [0], [0], [1], [0, 0, 1, 1], [], []>} : vector<8x4xbf16>, vector<4x32xbf16>, vector<8x32xf32> -> vector<8x32xf32>
    %15 = arith.addf %12, %14 : vector<8x32xf32>
    %c0_14 = arith.constant 0 : index
    %c0_15 = arith.constant 0 : index
    %16 = vector.load %arg7[%c0_14, %c0_15] : memref<1x32xf32, #tpu.memory_space<vmem>>, vector<1x32xf32>
    %17 = vector.broadcast %16 : vector<1x32xf32> to vector<8x32xf32>
    %18 = arith.addf %15, %17 : vector<8x32xf32>
    %cst_16 = arith.constant 0.00999999977 : f32
    %19 = vector.broadcast %cst_16 : f32 to vector<8x32xf32>
    %20 = arith.mulf %19, %18 : vector<8x32xf32>
    %21 = arith.maximumf %18, %20 : vector<8x32xf32>
    %22 = arith.truncf %21 : vector<8x32xf32> to vector<8x32xbf16>
    %c0_17 = arith.constant 0 : index
    %c0_18 = arith.constant 0 : index
    %23 = vector.load %arg8[%c0_17, %c0_18] : memref<32x32xbf16, #tpu.memory_space<vmem>>, vector<32x32xbf16>
    %cst_19 = arith.constant dense<0.000000e+00> : vector<8x32xf32>
    %24 = tpu.matmul %22, %23, %cst_19 {dimension_numbers = #tpu.dot_dimension_numbers<[1], [0], [0], [1], [0, 0, 1, 1], [], []>} : vector<8x32xbf16>, vector<32x32xbf16>, vector<8x32xf32> -> vector<8x32xf32>
    %c0_20 = arith.constant 0 : index
    %c0_21 = arith.constant 0 : index
    %25 = vector.load %arg9[%c0_20, %c0_21] : memref<1x32xf32, #tpu.memory_space<vmem>>, vector<1x32xf32>
    %26 = vector.broadcast %25 : vector<1x32xf32> to vector<8x32xf32>
    %27 = arith.addf %24, %26 : vector<8x32xf32>
    %cst_22 = arith.constant 0.00999999977 : f32
    %28 = vector.broadcast %cst_22 : f32 to vector<8x32xf32>
    %29 = arith.mulf %28, %27 : vector<8x32xf32>
    %30 = arith.maximumf %27, %29 : vector<8x32xf32>
    %31 = arith.truncf %30 : vector<8x32xf32> to vector<8x32xbf16>
    %c0_23 = arith.constant 0 : index
    %c0_24 = arith.constant 0 : index
    %32 = vector.load %arg10[%c0_23, %c0_24] : memref<32x1xbf16, #tpu.memory_space<vmem>>, vector<32x1xbf16>
    %cst_25 = arith.constant dense<0.000000e+00> : vector<8x1xf32>
    %33 = tpu.matmul %31, %32, %cst_25 {dimension_numbers = #tpu.dot_dimension_numbers<[1], [0], [0], [1], [0, 0, 1, 1], [], []>} : vector<8x32xbf16>, vector<32x1xbf16>, vector<8x1xf32> -> vector<8x1xf32>
    %c0_26 = arith.constant 0 : index
    %c0_27 = arith.constant 0 : index
    %34 = vector.load %arg11[%c0_26, %c0_27] : memref<1x1xf32, #tpu.memory_space<vmem>>, vector<1x1xf32>
    %35 = vector.broadcast %34 : vector<1x1xf32> to vector<8x1xf32>
    %36 = arith.addf %33, %35 : vector<8x1xf32>
    %37 = tpu.transpose %36, [1, 0] : vector<8x1xf32> -> vector<1x8xf32>
    %38 = vector.shape_cast %37 : vector<1x8xf32> to vector<1x1x8xf32>
    %c0_28 = arith.constant 0 : index
    %c0_29 = arith.constant 0 : index
    %c0_30 = arith.constant 0 : index
    %39 = vector.load %arg12[%c0_28, %c0_29, %c0_30] : memref<1x1x8xf32, #tpu.memory_space<vmem>>, vector<1x1x8xf32>
    tpu.vector_store %arg12[%c0_28, %c0_29, %c0_30], %38 {strides = array<i32>} : memref<1x1x8xf32, #tpu.memory_space<vmem>>, vector<1x1x8xf32>,
    return
  }
  func.func @transform_0(%arg0: i32) -> (i32, i32) {
    %c0_i32 = arith.constant 0 : i32
    %c0_i32_0 = arith.constant 0 : i32
    return %arg0, %c0_i32 : i32, i32
  }
  func.func @transform_1(%arg0: i32) -> (i32, i32) {
    %c0_i32 = arith.constant 0 : i32
    %c0_i32_0 = arith.constant 0 : i32
    return %arg0, %c0_i32 : i32, i32
  }
  func.func @transform_2(%arg0: i32) -> (i32, i32) {
    %c0_i32 = arith.constant 0 : i32
    %c0_i32_0 = arith.constant 0 : i32
    %c0_i32_1 = arith.constant 0 : i32
    return %c0_i32, %c0_i32_0 : i32, i32
  }
  func.func @transform_3(%arg0: i32) -> (i32, i32) {
    %c0_i32 = arith.constant 0 : i32
    %c0_i32_0 = arith.constant 0 : i32
    %c0_i32_1 = arith.constant 0 : i32
    return %c0_i32, %c0_i32_0 : i32, i32
  }
  func.func @transform_4(%arg0: i32) -> (i32, i32) {
    %c0_i32 = arith.constant 0 : i32
    %c0_i32_0 = arith.constant 0 : i32
    %c0_i32_1 = arith.constant 0 : i32
    return %c0_i32, %c0_i32_0 : i32, i32
  }
  func.func @transform_5(%arg0: i32) -> (i32, i32) {
    %c0_i32 = arith.constant 0 : i32
    %c0_i32_0 = arith.constant 0 : i32
    %c0_i32_1 = arith.constant 0 : i32
    return %c0_i32, %c0_i32_0 : i32, i32
  }
  func.func @transform_6(%arg0: i32) -> (i32, i32) {
    %c0_i32 = arith.constant 0 : i32
    %c0_i32_0 = arith.constant 0 : i32
    %c0_i32_1 = arith.constant 0 : i32
    return %c0_i32, %c0_i32_0 : i32, i32
  }
  func.func @transform_7(%arg0: i32) -> (i32, i32) {
    %c0_i32 = arith.constant 0 : i32
    %c0_i32_0 = arith.constant 0 : i32
    %c0_i32_1 = arith.constant 0 : i32
    return %c0_i32, %c0_i32_0 : i32, i32
  }
  func.func @transform_8(%arg0: i32) -> (i32, i32) {
    %c0_i32 = arith.constant 0 : i32
    %c0_i32_0 = arith.constant 0 : i32
    %c0_i32_1 = arith.constant 0 : i32
    return %c0_i32, %c0_i32_0 : i32, i32
  }
  func.func @transform_9(%arg0: i32) -> (i32, i32) {
    %c0_i32 = arith.constant 0 : i32
    %c0_i32_0 = arith.constant 0 : i32
    %c0_i32_1 = arith.constant 0 : i32
    return %c0_i32, %c0_i32_0 : i32, i32
  }
  func.func @transform_10(%arg0: i32) -> (i32, i32) {
    %c0_i32 = arith.constant 0 : i32
    %c0_i32_0 = arith.constant 0 : i32
    %c0_i32_1 = arith.constant 0 : i32
    return %c0_i32, %c0_i32_0 : i32, i32
  }
  func.func @transform_11(%arg0: i32) -> (i32, i32, i32) {
    %c0_i32 = arith.constant 0 : i32
    %c0_i32_0 = arith.constant 0 : i32
    %c0_i32_1 = arith.constant 0 : i32
    return %arg0, %c0_i32, %c0_i32_0 : i32, i32, i32
  }
}

</mosaic_0001>

<bundles_post_ra>
// kernel: tpu_custom_call.1
= control target key start
LH: loop header
LB: loop body
LE: loop exit
PB: predicated region body
PF: predicated region fallthrough
CT: control target
= control target key end

     0   :  { %s742_s0 = inlined_call_operand.hbm [shape: bf16[8,16], index: 0, kind: input, shape index: {}]   ;;  %s743_s1 = inlined_call_operand.vmem [shape: bf16[8,4], index: 1, kind: input, shape index: {}]   ;;  %s744_s2 = inlined_call_operand.hbm [shape: bf16[16,32], index: 2, kind: input, shape index: {}]   ;;  %s745_s3 = inlined_call_operand.vmem [shape: f32[1,32], index: 3, kind: input, shape index: {}]   ;;  %s746_s4 = inlined_call_operand.vmem [shape: bf16[32,32], index: 4, kind: input, shape index: {}]   ;;  %s747_s5 = inlined_call_operand.vmem [shape: bf16[4,32], index: 5, kind: input, shape index: {}]   ;;  %s748_s6 = inlined_call_operand.vmem [shape: f32[1,32], index: 6, kind: input, shape index: {}]   ;;  %s749_s7 = inlined_call_operand.vmem [shape: bf16[32,32], index: 7, kind: input, shape index: {}]   ;;  %s750_s8 = inlined_call_operand.vmem [shape: f32[1,32], index: 8, kind: input, shape index: {}]   ;;  %s751_s9 = inlined_call_operand.vmem [shape: bf16[32,1], index: 9, kind: input, shape index: {}]   ;;  %s752_s10 = inlined_call_operand.<no memory space> [shape: f32[1,1], index: 10, kind: input, shape index: {}]   ;;  %s753_s11 = inlined_call_operand.hbm [shape: f32[1,1,8], index: 11, kind: output, shape index: {}]  }
   0x1   :  { %v16_v0 = vstv %s752_s10 }
   0x2   :  { %17 = vst [vmem:[#allocation2] sm:$0x1] %v16_v0 }
   0x3   :  { %18 = vsyncpa [#allocation4], 0 }
   0x4   :  { %19 = vsyncpa [#allocation7], 0 }
   0x5   :  { %20 = vsyncpa [#allocation5], 0  ;;  %s588_s19 = smov [#allocation3]   ;;  %s589_s21 = smov [#allocation6]  }
   0x6   :  { %s27_s20 = sshll.u32 %s588_s19, 4  ;;  %s38_s22 = sshll.u32 %s589_s21, 4  ;;  %s28_s20 = int_to_ptr.vmem [resolvable:$true] %s27_s20  ;;  %s658_s22 = int_to_ptr.vmem [resolvable:$true] %s38_s22 }
   0x7   :  { %s516_s25 = scalar_lea.hbm %s742_s0, 64 }
   0x8   :  { %p517_p0 = scmp.ne.s32.totalorder %s742_s0, %s516_s25  ;;  %p520_p1 = scmp.lt.u32.totalorder %s516_s25, %s742_s0 }
   0xa   :  { %p522_p2 = pnand %p520_p1, %p517_p0 }
   0xc   :  { %525 = shalt.err (!%p522_p2)
}
   0xd   :  { %s526_s29 = scalar_lea.vmem %s28_s20, 64  ;;  %p531_p4 = scmp.lt.s32.totalorder %s28_s20, %s28_s20 }
   0xe   :  { %p527_p3 = scmp.ne.s32.totalorder %s28_s20, %s526_s29  ;;  %p532_p5 = scmp.lt.s32.totalorder %s526_s29, %s526_s29 }
  0x10   :  { %p533_p6 = por %p532_p5, %p531_p4 }
  0x12   :  { %p534_p7 = pnand %p533_p6, %p527_p3 }
  0x14   :  { %537 = shalt.err (!%p534_p7)
}
  0x15   :  { %30 = dma.hbm_to_vmem [thread:$0]  %s742_s0, 64, %s28_s20, [#allocation4]  }
  0x16   :  { %s538_s15 = scalar_lea.hbm %s744_s2, 128 }
  0x17   :  { %p539_p8 = scmp.ne.s32.totalorder %s744_s2, %s538_s15  ;;  %p542_p9 = scmp.lt.u32.totalorder %s538_s15, %s744_s2 }
  0x19   :  { %p544_p10 = pnand %p542_p9, %p539_p8 }
  0x1b   :  { %547 = shalt.err (!%p544_p10)
}
  0x1c   :  { %s548_s21 = scalar_lea.vmem %s658_s22, 128  ;;  %p553_p12 = scmp.lt.s32.totalorder %s658_s22, %s658_s22 }
  0x1d   :  { %p549_p11 = scmp.ne.s32.totalorder %s658_s22, %s548_s21  ;;  %p554_p13 = scmp.lt.s32.totalorder %s548_s21, %s548_s21 }
  0x1f   :  { %p555_p0 = por %p554_p13, %p553_p12 }
  0x21   :  { %p556_p1 = pnand %p555_p0, %p549_p11 }
  0x23   :  { %559 = shalt.err (!%p556_p1)
}
  0x24   :  { %s590_s0 = smov 64   ;;  %s591_s20 = smov 4  }
  0x25   :  { %44 = dma.hbm_to_vmem [thread:$0]  %s744_s2, 128, %s658_s22, [#allocation7], %s590_s0, %s590_s0, %s591_s20  }
  0x26   :  { %582 = dma.done.wait [#allocation4], 64  }
  0x27   :  { %583 = vsyncadd [#allocation4], 4294967232 }
  0x28   :  { %584 = dma.done.wait [#allocation7], 128  }
  0x29   :  { %585 = vsyncadd [#allocation7], 4294967168  ;;  %v592_v1 = vmov 0.0   ;;  %vm593_vm0 = vmmov 0   ;;  %v509_v2 = vld [vmem:[#allocation6] sm:$0xff]   ;;  %vm85_vm1 = vcmask 130048  }
  0x2a   :  { %466 = vmatprep.subr.bf16.mxu0 %v592_v1  ;;  %468 = vmatprep.mubr.msk.bf16.mxu0 %vm593_vm0, %v592_v1  ;;  %v68_v3 = vld [vmem:[#allocation3] sm:$0xf]  ;;  %vm141_vm2 = vcmask 1041408   ;;  %v511_v7 = vld [vmem:[%s746_s4 + $0x8] sm:$0xff]   ;;  %vm137_vm3 = vcmask 31744   ;;  %vm197_vm4 = vcmask 261120  }
  0x2b   :  { %472 = vmatprep.subr.bf16.mxu1 %v592_v1  ;;  %474 = vmatprep.mubr.msk.bf16.mxu1 %vm593_vm0, %v592_v1  ;;  %v510_v4 = vld [vmem:[%s746_s4] sm:$0xff]   ;;  %v513_v23 = vld [vmem:[%s749_s7 + $0x8] sm:$0xff]   ;;  %vm419_vm5 = vcmask 57344  }
  0x2c   :  { %467 = vmatpush3.bf16.msra.mxu0 %v509_v2  ;;  %v136_v5 = vld [vmem:[%s747_s5] sm:$0x3]  ;;  %v515_v35 = vld [vmem:[%s751_s9 + $0x8] sm:$0xff]  }
  0x2d   :  { %478 = vmatprep.subr.bf16.mxu0 %v592_v1  ;;  %v143_v6 = vsel %vm141_vm2, %v136_v5, 0  ;;  %v69_v8 = vld [vmem:[%s743_s1] sm:$0xf] }
  0x2e   :  { %473 = vmatpush3.bf16.msra.mxu1 %v143_v6  ;;  %v437_v9 = vld [vmem:[%s745_s3] ss:$0 sm:$0xff] }
  0x2f   :  { %469 = vmatmul.mubr.msk.bf16.vlgmr.msra.gmra.mrb[0].mxu0 %vm85_vm1, %v68_v3  ;;  %486 = vmatprep.subr.bf16.mxu1 %v592_v1  ;;  %v512_v22 = vld [vmem:[%s749_s7] sm:$0xff]  }
  0x30   :  { %482 = vmatprep.mubr.msk.bf16.mxu0 %vm593_vm0, %v592_v1  ;;  %479 = vmatpush3.bf16.msra.mxu0 %v510_v4  ;;  %v444_v25 = vld [vmem:[%s748_s6] ss:$0 sm:$0xff] }
  0x31   :  { %480 = vmatprep.subr.bf16.mxu0 %v592_v1  ;;  %475 = vmatmul.mubr.msk.bf16.vlgmr.msra.gmra.mrb[0].mxu1 %vm137_vm3, %v69_v8  ;;  %v514_v34 = vld [vmem:[%s751_s9] sm:$0xff]   ;;  %s594_s9 = smov [#allocation8]  }
  0x32   :  { %490 = vmatprep.mubr.msk.bf16.mxu1 %vm593_vm0, %v592_v1  ;;  %487 = vmatpush3.bf16.msra.mxu1 %v512_v22  ;;  %v445_v36 = vld [vmem:[%s750_s8] ss:$0 sm:$0xff]  ;;  %s427_s19 = sshll.u32 %s594_s9, 4  ;;  %s428_s19 = int_to_ptr.vmem [resolvable:$true] %s427_s19 }
  0x33   :  { %488 = vmatprep.subr.bf16.mxu1 %v592_v1  ;;  %v449_v45 = vld [vmem:[#allocation2] ss:$0 sm:$0xff]  ;;  %s560_s8 = scalar_lea.vmem %s428_s19, 16  ;;  %s564_s21 = scalar_lea.vmem %s428_s19, 32 }
  0x34   :  { %481 = vmatpush3.bf16.msra.mxu0 %v511_v7  ;;  %p561_p2 = scmp.ne.s32.totalorder %s428_s19, %s560_s8  ;;  %p565_p3 = scmp.lt.s32.totalorder %s428_s19, %s428_s19 }
  0x35   :  { %494 = vmatprep.subr.bf16.mxu0 %v592_v1  ;;  %p566_p4 = scmp.lt.s32.totalorder %s564_s21, %s560_s8 }
  0x36   :  { %489 = vmatpush3.bf16.msra.mxu1 %v513_v23 }
  0x37   :  { %p567_p5 = por %p566_p4, %p565_p3 }
  0x39   :  { %p568_p6 = pnand %p567_p5, %p561_p2 }
 0x102   :  { %v123_v10 = vpop.f32.mrb[0].mxu0 }
 0x103   :  { %v124_v11 = vadd.f32 %v437_v9, %v123_v10  ;;  %v470_v12 = vpop.f32.mrb[1].mxu0 }
 0x104   :  { %v126_v13 = vpop.f32.mrb[2].mxu0  ;;  %v179_v18 = vpop.f32.mrb[0].mxu1 }
 0x105   :  { %v129_v14 = vmul.f32 0.01, %v124_v11  ;;  %v471_v15 = vpop.f32.mrb[3].mxu0  ;;  %v476_v19 = vpop.f32.mrb[1].mxu1 }
 0x106   :  { %v182_v20 = vpop.f32.mrb[2].mxu1 }
 0x107   :  { %v130_v16 = vmax.f32 %v124_v11, %v129_v14  ;;  %v477_v21 = vpop.f32.mrb[3].mxu1 }
 0x109   :  { %v131_v17 = vpack.c.bf16 %v130_v16, %v130_v16 }
 0x10b   :  { %483 = vmatmul.mubr.msk.bf16.vlgmr.msra.gmra.mrb[4].mxu0 %vm197_vm4, %v131_v17 }
 0x10c   :  { %498 = vmatprep.mubr.msk.bf16.mxu0 %vm593_vm0, %v592_v1  ;;  %495 = vmatpush3.bf16.msra.mxu0 %v514_v34 }
 0x10d   :  { %496 = vmatprep.subr.bf16.mxu0 %v592_v1 }
 0x110   :  { %497 = vmatpush3.bf16.msra.mxu0 %v515_v35 }
 0x1de   :  { %v235_v24 = vpop.f32.mrb[4].mxu0 }
 0x1df   :  { %v236_v26 = vadd.f32 %v235_v24, %v179_v18  ;;  %v484_v27 = vpop.f32.mrb[5].mxu0 }
 0x1e0   :  { %v238_v28 = vpop.f32.mrb[6].mxu0 }
 0x1e1   :  { %v248_v29 = vadd.f32 %v444_v25, %v236_v26  ;;  %v485_v30 = vpop.f32.mrb[7].mxu0 }
 0x1e3   :  { %v249_v31 = vmul.f32 0.01, %v248_v29 }
 0x1e5   :  { %v250_v32 = vmax.f32 %v248_v29, %v249_v31 }
 0x1e7   :  { %v251_v33 = vpack.c.bf16 %v250_v32, %v250_v32 }
 0x1e9   :  { %491 = vmatmul.mubr.msk.bf16.vlgmr.msra.gmra.mrb[4].mxu1 %vm197_vm4, %v251_v33 }
 0x2bc   :  { %v312_v37 = vpop.f32.mrb[4].mxu1 }
 0x2bd   :  { %v313_v38 = vadd.f32 %v445_v36, %v312_v37  ;;  %v492_v39 = vpop.f32.mrb[5].mxu1 }
 0x2be   :  { %v315_v40 = vpop.f32.mrb[6].mxu1 }
 0x2bf   :  { %v318_v41 = vmul.f32 0.01, %v313_v38  ;;  %v493_v42 = vpop.f32.mrb[7].mxu1 }
 0x2c1   :  { %v319_v43 = vmax.f32 %v313_v38, %v318_v41 }
 0x2c3   :  { %v320_v44 = vpack.c.bf16 %v319_v43, %v319_v43 }
 0x2c5   :  { %499 = vmatmul.mubr.msk.bf16.vlgmr.msra.gmra.mrb[8].mxu0 %vm197_vm4, %v320_v44 }
 0x398   :  { %v381_v46 = vpop.f32.mrb[8].mxu0 }
 0x399   :  { %v500_v47 = vpop.f32.mrb[9].mxu0  ;;  %v382_v48 = vadd.f32 %v449_v45, %v381_v46 }
 0x39a   :  { %v384_v49 = vpop.f32.mrb[10].mxu0 }
 0x39b   :  { %387 = vxpose.xlu0.b32.start.end [1/1] (short) (narrow) %v382_v48, 8  ;;  %v501_v50 = vpop.f32.mrb[11].mxu0 }
 0x41b   :  { %v403_v51 = vpop.trf.xlu0 }
 0x41c   :  { %420 = vst.msk [vmem:[#allocation8] sm:$0x1] %vm419_vm5, %v403_v51 }
 0x41d   :  { %571 = shalt.err (!%p568_p6)
}
 0x41e   :  { %s572_s23 = scalar_lea.hbm %s753_s11, 16 }
 0x41f   :  { %p573_p7 = scmp.ne.s32.totalorder %s753_s11, %s572_s23  ;;  %p576_p8 = scmp.lt.u32.totalorder %s572_s23, %s753_s11 }
 0x421   :  { %p578_p9 = pnand %p576_p8, %p573_p7 }
 0x423   :  { %581 = shalt.err (!%p578_p9)
}
 0x424   :  { %430 = dma.vmem_to_hbm [thread:$0]  %s428_s19, 16, %s753_s11, [#allocation5]  }
 0x425   :  { %586 = dma.done.wait [#allocation5], 16  }
 0x426   :  { %587 = vsyncadd [#allocation5], 4294967280 }
 0x427   :  { %434 = vsyncpa [#allocation4], 1 }
 0x428   :  { %435 = vsyncpa [#allocation7], 1 }
 0x429   :  { %436 = vsyncpa [#allocation5], 1 }

</bundles_post_ra>
